<compile_context>
chip_gen: v6e
topology: v6e:2x2x1
jax: 0.10.0
libtpu: 0.0.40
codegen_flags: <defaults>
</compile_context>

<pallas_src>
import functools

import jax
import jax.numpy as jnp
from jax.experimental import pallas as pl
from jax.experimental.pallas import tpu as pltpu


def _round_up(x, m):
    return (x + m - 1) // m * m


def _pick_vmem_limit_bytes():
    """Per-generation scoped-VMEM budget with ~16 MiB headroom.

    v7x (64 MiB physical) -> 48 MiB; v5e/v6e (128 MiB) -> 96 MiB.  Conservative
    48 MiB fallback if the hardware query is unavailable.
    """
    phys_mib = 64
    try:
        phys_mib = pltpu.get_tpu_info().vmem_capacity_bytes // (1024 * 1024)
    except Exception:  # pragma: no cover - keep the safe fallback
        pass
    return int(max(32, min(96, phys_mib - 16))) * 1024 * 1024


def _textcnn_kernel(tp, emb_ref, w_ref, bm_ref, fcw_ref, fcb_ref, out_ref):
    """Fused im2col conv (all branches) + bias + ReLU + masked max-pool + fc.

    emb_ref : (TB*tp, E)  bf16  batch-tile of shared zero-padded embeddings,
                                (batch, time) flattened onto the sublane axis
    w_ref   : (R*E, NP)   bf16  all conv branches/rows packed; NP = pad(K*C,128)
    bm_ref  : (tp, NP)    f32   per-position conv bias, -1e30 where invalid
                                (shared across the batch -> broadcast in-kernel)
    fcw_ref : (NP, OP)    bf16  lane-padded fc weight
    fcb_ref : (1, OP)     f32   lane-padded fc bias
    out_ref : (TB, OP)    f32
    """
    emb = emb_ref[...]
    M, E = emb.shape
    KE, NP = w_ref.shape
    R = KE // E
    TB = M // tp

    # im2col along time via row shifts.  Rows that would read past a batch
    # row's time window only feed output positions that bm_ref masks to -1e30,
    # so the zero fill / cross-row bleed is inert.
    # TODO(synk): pltpu.roll(emb, M - r, axis=0) would move these shifts to the
    #             otherwise-idle XLU, but odd-amount sublane rotation of packed
    #             bf16 is not reliably lowered, so keep the proven slice+concat.
    pieces = [emb]
    for r in range(1, R):
        pieces.append(jnp.concatenate(
            [emb[r:, :], jnp.zeros((r, E), emb.dtype)], axis=0))
    x = jnp.concatenate(pieces, axis=-1)                          # (M, R*E)

    # One MXU matmul for every branch and every kernel row at once (f32 accum).
    s = jnp.dot(x, w_ref[...], preferred_element_type=jnp.float32)  # (M, NP)

    # bias + validity mask (-1e30, broadcast over the batch axis) + ReLU:
    # masked positions become exactly 0 and cannot win the max (every real
    # column has >= 1 valid ReLU'd (>= 0) entry).
    a = jnp.maximum(s.reshape(TB, tp, NP) + bm_ref[...], 0.0)    # (TB, tp, NP)

    # Global max-pool over each batch row's tp time steps: a single fused
    # sublane reduction (layout-preserving reshape since tp % 8 == 0).
    feat = jnp.max(a, axis=1)                                    # (TB, NP)

    # Dropout is identity in eval mode.  Final linear (lane-dense output store).
    out = jnp.dot(feat.astype(fcw_ref.dtype), fcw_ref[...],
                  preferred_element_type=jnp.float32) + fcb_ref[...]
    out_ref[...] = out.astype(out_ref.dtype)


def pack_textcnn_params(emb_table, conv_ws, conv_bs, conv_params, fc_w, fc_b, T):
    """Precompute all grid-invariant kernel operands.  Call ONCE at model init.

    Returns bf16 embedding table, packed conv weight, fused bias+validity mask
    (NOT tiled by the batch tile), lane-padded fc weight/bias, and geometry.
    """
    E = emb_table.shape[1]
    C = conv_ws[0].shape[-1]
    K = len(conv_params)
    O = fc_w.shape[-1]

    for kh, pad in conv_params:
        assert T + 2 * pad >= kh, "conv output length must be >= 1 per branch"

    pad_max = max(p for _, p in conv_params)
    R = max((pad_max - p) + kh for kh, p in conv_params)   # packed-weight row count
    Tp = T + 2 * pad_max                                   # logical padded length
    Tp_pad = _round_up(Tp, 8)                              # sublane-aligned
    NP = _round_up(K * C, 128)                             # lane-padded conv channels
    OP = _round_up(O, 128)                                 # lane-padded fc output

    # Pack every conv branch/row into one (R*E, NP) matmul weight; build the
    # fused bias + validity mask (valid iff t < L_k for branch k).
    NEG = -1e30
    w_pack = jnp.zeros((R * E, NP), jnp.float32)
    bm = jnp.full((Tp_pad, NP), NEG, jnp.float32)
    for k, ((kh, pad), w, b) in enumerate(zip(conv_params, conv_ws, conv_bs)):
        off = pad_max - pad                                # branch window offset
        L_k = T + 2 * pad - kh + 1                         # branch conv output length
        for r in range(kh):
            w_pack = w_pack.at[(off + r) * E:(off + r + 1) * E,
                               k * C:(k + 1) * C].set(w[r])
        bm = bm.at[:L_k, k * C:(k + 1) * C].set(
            jnp.broadcast_to(b.astype(jnp.float32), (L_k, C)))

    fc_w_pad = jnp.zeros((NP, OP), jnp.float32).at[:K * C, :O].set(fc_w)
    fc_b_pad = jnp.zeros((1, OP), jnp.float32).at[0, :O].set(fc_b)

    return dict(
        emb_table=emb_table.astype(jnp.bfloat16),   # bf16 gather halves HBM bytes
        w_pack=w_pack.astype(jnp.bfloat16),
        bias_mask=bm,                               # (Tp_pad, NP): not batch-tiled
        fc_w=fc_w_pad.astype(jnp.bfloat16),
        fc_b=fc_b_pad,
        geom=dict(E=E, O=O, R=R, pad_max=pad_max, T=T,
                  Tp_pad=Tp_pad, NP=NP, OP=OP),
    )


def textcnn_forward(tokens, packed, *, block_b=None):
    """Embedding gather in JAX; fused conv/ReLU/max-pool/fc in one Pallas kernel."""
    g = packed["geom"]
    E, O, R, pad_max = g["E"], g["O"], g["R"], g["pad_max"]
    T, Tp_pad, NP, OP = g["T"], g["Tp_pad"], g["NP"], g["OP"]
    B, T_in = tokens.shape
    assert T_in == T

    # Batch tile: aim for TB*Tp_pad ~ 1K sublanes (amortizes grid-step overhead
    # and fills the MXU M dim) but never pad the batch past round_up(B, 8).
    # Grid-invariant operands are tiny, so the per-step working set
    # (~TB*Tp_pad*(2*E*2B + R*E*2B + 2*NP*4B) incl. double buffering) stays far
    # under the per-generation VMEM limit chosen below.
    if block_b is None:
        block_b = max(8, min(_round_up(B, 8), ((1024 // Tp_pad) // 8) * 8))
    TB = block_b
    assert TB % 8 == 0, "batch tile must be a multiple of 8 (sublane)"
    B_pad = _round_up(B, TB)

    # Embedding gather + ONE shared zero-padding, entirely in bf16.
    emb = packed["emb_table"][tokens]                      # (B, T, E) bf16
    emb = jnp.pad(emb, ((0, B_pad - B),
                        (pad_max, Tp_pad - T - pad_max),
                        (0, 0)))
    emb2 = emb.reshape(B_pad * Tp_pad, E)

    grid = (B_pad // TB,)
    M_blk = TB * Tp_pad
    out = pl.pallas_call(
        functools.partial(_textcnn_kernel, Tp_pad),
        out_shape=jax.ShapeDtypeStruct((B_pad, OP), jnp.float32),
        grid=grid,
        in_specs=[
            # streamed per grid step (double-buffered by the pipeline)
            pl.BlockSpec((M_blk, E), lambda i: (i, 0)),
            # grid-invariant operands (constant index_map -> fetched once).
            # TODO(synk): pipeline_mode=pl.Buffered(1) would drop their second
            #             buffer; they are tiny here so the VMEM win is minor.
            pl.BlockSpec((R * E, NP), lambda i: (0, 0)),       # packed conv weight
            pl.BlockSpec((Tp_pad, NP), lambda i: (0, 0)),      # bias + validity mask
            pl.BlockSpec((NP, OP), lambda i: (0, 0)),          # fc weight
            pl.BlockSpec((1, OP), lambda i: (0, 0)),           # fc bias
        ],
        out_specs=pl.BlockSpec((TB, OP), lambda i: (i, 0)),
        compiler_params=pltpu.CompilerParams(
            dimension_semantics=("parallel",),     # megacore / dual-TC batch split
            vmem_limit_bytes=_pick_vmem_limit_bytes(),
        ),
    )(emb2, packed["w_pack"], packed["bias_mask"], packed["fc_w"], packed["fc_b"])
    return out[:B, :O]


def textcnn_reference(tokens, emb_table, conv_ws, conv_bs, conv_params, fc_w, fc_b):
    """Pure-JAX f32 reference mirroring the PyTorch forward (eval mode)."""
    emb = emb_table[tokens]
    feats = []
    for (kh, pad), w, b in zip(conv_params, conv_ws, conv_bs):
        e = jnp.pad(emb, ((0, 0), (pad, pad), (0, 0)))
        L = e.shape[1] - kh + 1
        acc = jnp.zeros((emb.shape[0], L, w.shape[-1]), jnp.float32)
        for r in range(kh):
            acc = acc + jnp.einsum("ble,ec->blc", e[:, r:r + L, :], w[r])
        acc = jax.nn.relu(acc + b.reshape(1, 1, -1))
        feats.append(jnp.max(acc, axis=1))
    feat = jnp.concatenate(feats, axis=1)
    return feat @ fc_w + fc_b


if __name__ == "__main__":
    # Small, deterministic configuration consistent with the module's __init__.
    vocab_size = 20
    emb_size = 32
    padding_idx = 0
    output_size = 4
    out_channels = 4
    conv_params = [(3, 1), (4, 2), (5, 2)]     # (kernel_height, padding)
    drop_rate = 0.5                            # inference mode -> no-op
    B, T = 13, 9                               # non-multiples of 8: exercises padding

    key = jax.random.PRNGKey(0)
    k_tok, k_emb, k_fc_w, k_fc_b, *k_convs = jax.random.split(
        key, 4 + 2 * len(conv_params))

    tokens = jax.random.randint(k_tok, (B, T), 0, vocab_size, dtype=jnp.int32)

    emb_table = 0.1 * jax.random.normal(k_emb, (vocab_size, emb_size), jnp.float32)
    emb_table = emb_table.at[padding_idx].set(0.0)     # nn.Embedding padding_idx row

    conv_ws, conv_bs = [], []
    for i, (kh, _pad) in enumerate(conv_params):
        kw, kb = k_convs[2 * i], k_convs[2 * i + 1]
        conv_ws.append(0.1 * jax.random.normal(kw, (kh, emb_size, out_channels), jnp.float32))
        conv_bs.append(0.1 * jax.random.normal(kb, (out_channels,), jnp.float32))

    fc_in = len(conv_params) * out_channels
    fc_w = 0.1 * jax.random.normal(k_fc_w, (fc_in, output_size), jnp.float32)
    fc_b = 0.1 * jax.random.normal(k_fc_b, (output_size,), jnp.float32)

    # Constant packing happens ONCE (model init), not per forward call.
    packed = pack_textcnn_params(emb_table, conv_ws, conv_bs, conv_params,
                                 fc_w, fc_b, T)

    out = textcnn_forward(tokens, packed)
    out = jax.block_until_ready(out)

    ref = textcnn_reference(tokens, emb_table, conv_ws, conv_bs, conv_params, fc_w, fc_b)
    assert out.shape == (B, output_size), out.shape
    # bf16 matmul inputs / f32 accumulation vs f32 reference.
    assert jnp.allclose(out, ref, atol=2e-2, rtol=2e-2), (out, ref)

    print("KERNEL_OK")
</pallas_src>

<mosaic_0001>
module attributes {stable_mosaic.version = 11 : i64} {
  func.func @_textcnn_kernel(%arg0: i32, %arg1: memref<256x32xbf16, #tpu.memory_space<vmem>>, %arg2: memref<160x128xbf16, #tpu.memory_space<vmem>>, %arg3: memref<16x128xf32, #tpu.memory_space<vmem>>, %arg4: memref<128x128xbf16, #tpu.memory_space<vmem>>, %arg5: memref<1x128xf32, #tpu.memory_space<vmem>>, %arg6: memref<16x128xf32, #tpu.memory_space<vmem>>) attributes {dimension_semantics = [#tpu.dimension_semantics<parallel>], iteration_bounds = array<i64: 1>, scalar_prefetch = 0 : i64, scratch_operands = 0 : i64, tpu.core_type = #tpu.core_type<tc>, window_params = [{transform_indices = @transform_0, window_bounds = array<i64: 256, 32>}, {pipeline_mode = #tpu.pipeline_mode<synchronous>, transform_indices = @transform_1, window_bounds = array<i64: 160, 128>}, {pipeline_mode = #tpu.pipeline_mode<synchronous>, transform_indices = @transform_2, window_bounds = array<i64: 16, 128>}, {pipeline_mode = #tpu.pipeline_mode<synchronous>, transform_indices = @transform_3, window_bounds = array<i64: 128, 128>}, {pipeline_mode = #tpu.pipeline_mode<synchronous>, transform_indices = @transform_4, window_bounds = array<i64: 1, 128>}, {transform_indices = @transform_5, window_bounds = array<i64: 16, 128>}]} {
    %c0 = arith.constant 0 : index
    %c0_0 = arith.constant 0 : index
    %0 = vector.load %arg1[%c0, %c0_0] : memref<256x32xbf16, #tpu.memory_space<vmem>>, vector<256x32xbf16>
    %1 = vector.extract_strided_slice %0 {offsets = [1, 0], sizes = [255, 32], strides = [1, 1]} : vector<256x32xbf16> to vector<255x32xbf16>
    %cst = arith.constant 0.000000e+00 : bf16
    %2 = vector.broadcast %cst : bf16 to vector<1x32xbf16>
    %3 = tpu.concatenate %1, %2 in 0 : vector<255x32xbf16>, vector<1x32xbf16> -> vector<256x32xbf16>
    %4 = vector.extract_strided_slice %0 {offsets = [2, 0], sizes = [254, 32], strides = [1, 1]} : vector<256x32xbf16> to vector<254x32xbf16>
    %cst_1 = arith.constant 0.000000e+00 : bf16
    %5 = vector.broadcast %cst_1 : bf16 to vector<2x32xbf16>
    %6 = tpu.concatenate %4, %5 in 0 : vector<254x32xbf16>, vector<2x32xbf16> -> vector<256x32xbf16>
    %7 = vector.extract_strided_slice %0 {offsets = [3, 0], sizes = [253, 32], strides = [1, 1]} : vector<256x32xbf16> to vector<253x32xbf16>
    %cst_2 = arith.constant 0.000000e+00 : bf16
    %8 = vector.broadcast %cst_2 : bf16 to vector<3x32xbf16>
    %9 = tpu.concatenate %7, %8 in 0 : vector<253x32xbf16>, vector<3x32xbf16> -> vector<256x32xbf16>
    %10 = vector.extract_strided_slice %0 {offsets = [4, 0], sizes = [252, 32], strides = [1, 1]} : vector<256x32xbf16> to vector<252x32xbf16>
    %cst_3 = arith.constant 0.000000e+00 : bf16
    %11 = vector.broadcast %cst_3 : bf16 to vector<4x32xbf16>
    %12 = tpu.concatenate %10, %11 in 0 : vector<252x32xbf16>, vector<4x32xbf16> -> vector<256x32xbf16>
    %13 = tpu.concatenate %0, %3, %6, %9, %12 in 1 : vector<256x32xbf16>, vector<256x32xbf16>, vector<256x32xbf16>, vector<256x32xbf16>, vector<256x32xbf16> -> vector<256x160xbf16>
    %c0_4 = arith.constant 0 : index
    %c0_5 = arith.constant 0 : index
    %14 = vector.load %arg2[%c0_4, %c0_5] : memref<160x128xbf16, #tpu.memory_space<vmem>>, vector<160x128xbf16>
    %cst_6 = arith.constant dense<0.000000e+00> : vector<256x128xf32>
    %15 = tpu.matmul %13, %14, %cst_6 {dimension_numbers = #tpu.dot_dimension_numbers<[1], [0], [0], [1], [0, 0, 1, 1], [], []>} : vector<256x160xbf16>, vector<160x128xbf16>, vector<256x128xf32> -> vector<256x128xf32>
    %16 = vector.shape_cast %15 : vector<256x128xf32> to vector<16x16x128xf32>
    %c0_7 = arith.constant 0 : index
    %c0_8 = arith.constant 0 : index
    %17 = vector.load %arg3[%c0_7, %c0_8] : memref<16x128xf32, #tpu.memory_space<vmem>>, vector<16x128xf32>
    %18 = vector.shape_cast %17 : vector<16x128xf32> to vector<1x16x128xf32>
    %19 = vector.broadcast %18 : vector<1x16x128xf32> to vector<16x16x128xf32>
    %20 = arith.addf %16, %19 : vector<16x16x128xf32>
    %cst_9 = arith.constant 0.000000e+00 : f32
    %21 = vector.broadcast %cst_9 : f32 to vector<16x16x128xf32>
    %22 = arith.maximumf %20, %21 : vector<16x16x128xf32>
    %cst_10 = arith.constant dense<0xFF800000> : vector<16x128xf32>
    %23 = vector.multi_reduction <maximumf>, %22, %cst_10 [1] : vector<16x16x128xf32> to vector<16x128xf32>
    %24 = arith.truncf %23 : vector<16x128xf32> to vector<16x128xbf16>
    %c0_11 = arith.constant 0 : index
    %c0_12 = arith.constant 0 : index
    %25 = vector.load %arg4[%c0_11, %c0_12] : memref<128x128xbf16, #tpu.memory_space<vmem>>, vector<128x128xbf16>
    %cst_13 = arith.constant dense<0.000000e+00> : vector<16x128xf32>
    %26 = tpu.matmul %24, %25, %cst_13 {dimension_numbers = #tpu.dot_dimension_numbers<[1], [0], [0], [1], [0, 0, 1, 1], [], []>} : vector<16x128xbf16>, vector<128x128xbf16>, vector<16x128xf32> -> vector<16x128xf32>
    %c0_14 = arith.constant 0 : index
    %c0_15 = arith.constant 0 : index
    %27 = vector.load %arg5[%c0_14, %c0_15] : memref<1x128xf32, #tpu.memory_space<vmem>>, vector<1x128xf32>
    %28 = vector.broadcast %27 : vector<1x128xf32> to vector<16x128xf32>
    %29 = arith.addf %26, %28 : vector<16x128xf32>
    %c0_16 = arith.constant 0 : index
    %c0_17 = arith.constant 0 : index
    %30 = vector.load %arg6[%c0_16, %c0_17] : memref<16x128xf32, #tpu.memory_space<vmem>>, vector<16x128xf32>
    tpu.vector_store %arg6[%c0_16, %c0_17], %29 {strides = array<i32>} : memref<16x128xf32, #tpu.memory_space<vmem>>, vector<16x128xf32>,
    return
  }
  func.func @transform_0(%arg0: i32) -> (i32, i32) {
    %c0_i32 = arith.constant 0 : i32
    %c0_i32_0 = arith.constant 0 : i32
    return %arg0, %c0_i32 : i32, i32
  }
  func.func @transform_1(%arg0: i32) -> (i32, i32) {
    %c0_i32 = arith.constant 0 : i32
    %c0_i32_0 = arith.constant 0 : i32
    %c0_i32_1 = arith.constant 0 : i32
    return %c0_i32, %c0_i32_0 : i32, i32
  }
  func.func @transform_2(%arg0: i32) -> (i32, i32) {
    %c0_i32 = arith.constant 0 : i32
    %c0_i32_0 = arith.constant 0 : i32
    %c0_i32_1 = arith.constant 0 : i32
    return %c0_i32, %c0_i32_0 : i32, i32
  }
  func.func @transform_3(%arg0: i32) -> (i32, i32) {
    %c0_i32 = arith.constant 0 : i32
    %c0_i32_0 = arith.constant 0 : i32
    %c0_i32_1 = arith.constant 0 : i32
    return %c0_i32, %c0_i32_0 : i32, i32
  }
  func.func @transform_4(%arg0: i32) -> (i32, i32) {
    %c0_i32 = arith.constant 0 : i32
    %c0_i32_0 = arith.constant 0 : i32
    %c0_i32_1 = arith.constant 0 : i32
    return %c0_i32, %c0_i32_0 : i32, i32
  }
  func.func @transform_5(%arg0: i32) -> (i32, i32) {
    %c0_i32 = arith.constant 0 : i32
    %c0_i32_0 = arith.constant 0 : i32
    return %arg0, %c0_i32 : i32, i32
  }
}

</mosaic_0001>

<bundles_post_ra>
// kernel: tpu_custom_call.1
= control target key start
LH: loop header
LB: loop body
LE: loop exit
PB: predicated region body
PF: predicated region fallthrough
CT: control target
= control target key end

     0   :  { %vm266_vm0 = vcmask 1046528   ;;  %vm302_vm1 = vsmask.f32 6400  ;;  %vm134_vm2 = vsmask.f32 7424  ;;  %s1450_s26 = smov 64   ;;  %s2083_s0 = inlined_call_operand.vmem [shape: bf16[256,32], index: 0, kind: input, shape index: {}]   ;;  %s2084_s1 = inlined_call_operand.vmem [shape: bf16[160,128], index: 1, kind: input, shape index: {}]   ;;  %s2085_s2 = inlined_call_operand.vmem [shape: f32[16,128], index: 2, kind: input, shape index: {}]   ;;  %s2086_s3 = inlined_call_operand.vmem [shape: bf16[128,128], index: 3, kind: input, shape index: {}]   ;;  %s2087_s4 = inlined_call_operand.vmem [shape: f32[1,128], index: 4, kind: input, shape index: {}]   ;;  %s2088_s5 = inlined_call_operand.hbm [shape: f32[16,128], index: 5, kind: output, shape index: {}]  }
   0x1   :  { %v1492_v0 = vld [vmem:[%s2083_s0] sm:$0xff]   ;;  %v1497_v1 = vld [vmem:[%s2083_s0 + $0x8] sm:$0xff]   ;;  %v1502_v2 = vld [vmem:[%s2083_s0 + $0x10] sm:$0xff]   ;;  %s1451_s29 = smov 96   ;;  %s1452_s7 = smov 32  }
   0x2   :  { %v267_v3 = vrot.slane %v1492_v0, 1  ;;  %v268_v4 = vrot.slane %v1497_v1, 1  ;;  %v136_v5 = vshrl.u32 %v1492_v0, 16  ;;  %v138_v6 = vshll.u32 %v1492_v0, 16  ;;  %v1514_v10 = vld [vmem:[%s2083_s0 + $0x18] sm:$0xff]   ;;  %vm1519_vm3 = vmand %vm266_vm0, %vm302_vm1  ;;  %v1533_v26 = vld [vmem:[%s2083_s0 + $0x48] sm:$0xff]  }
   0x3   :  { %v270_v7 = vrot.slane %v1502_v2, 1  ;;  %v143_v8 = vshll.u32 %v1497_v1, 16  ;;  %v147_v9 = vshrl.u32 %v1497_v1, 16  ;;  %v151_v20 = vshll.u32 %v1502_v2, 16  ;;  %v1544_v40 = vld [vmem:[%s2083_s0 + $0x50] sm:$0xff]   ;;  %v1555_v46 = vld [vmem:[%s2083_s0 + $0x20] sm:$0xff]  }
   0x4   :  { %v269_v11 = vsel %vm266_vm0, %v267_v3, %v268_v4  ;;  %v303_v12 = vrot.slane %v136_v5, 1  ;;  %v304_v13 = vrot.slane %v138_v6, 2  ;;  %v140_v21 = vrot.slane %v138_v6, 1 }
   0x5   :  { %438 = vrot.lane.b32.xlu0 %v269_v11, %s1450_s26  ;;  %v271_v15 = vsel %vm266_vm0, %v268_v4, %v270_v7  ;;  %v306_v16 = vrot.slane %v147_v9, 1  ;;  %v307_v17 = vrot.slane %v143_v8, 2  ;;  %v145_v18 = vrot.slane %v143_v8, 1  ;;  %v1584_v11 = vld [vmem:[%s2083_s0 + $0x58] sm:$0xff]  }
   0x6   :  { %v305_v19 = vor.u32 %v304_v13, %v303_v12  ;;  %v155_v22 = vshrl.u32 %v1502_v2, 16  ;;  %v159_v25 = vshll.u32 %v1514_v10, 16  ;;  %v153_v27 = vrot.slane %v151_v20, 1 }
   0x7   :  { %v308_v23 = vor.u32 %v307_v17, %v306_v16  ;;  %v149_v24 = vor.u32 %v147_v9, %v145_v18  ;;  %v141_v28 = vor.u32 %v140_v21, %v136_v5  ;;  %v311_v30 = vrot.slane %v151_v20, 2 }
   0x8   :  { %v310_v29 = vrot.slane %v155_v22, 1  ;;  %v161_v32 = vrot.slane %v159_v25, 1  ;;  %v163_v33 = vshrl.u32 %v1514_v10, 16  ;;  %v157_v36 = vor.u32 %v155_v22, %v153_v27 }
   0x9   :  { %440 = vrot.lane.b32.xlu0 %v271_v15, %s1450_s26  ;;  %v309_v31 = vsel %vm302_vm1, %v305_v19, %v308_v23  ;;  %v154_v34 = vsel %vm134_vm2, %v149_v24, %v153_v27  ;;  %v146_v35 = vsel %vm134_vm2, %v141_v28, %v145_v18  ;;  %v315_v39 = vrot.slane %v159_v25, 2  ;;  %v1597_v19 = vld [vmem:[%s2083_s0 + $0x28] sm:$0xff]  }
   0xa   :  { %471 = vrot.lane.b32.xlu1 %v309_v31, %s1451_s29  ;;  %v312_v37 = vor.u32 %v311_v30, %v310_v29  ;;  %v314_v38 = vrot.slane %v163_v33, 1  ;;  %v207_v41 = vshll.u32 %v1533_v26, 16  ;;  %v272_v42 = vrot.slane %v1514_v10, 1  ;;  %v1609_v30 = vld [vmem:[%s2083_s0 + $0x60] sm:$0xff]  }
   0xb   :  { %v162_v43 = vsel %vm134_vm2, %v157_v36, %v161_v32  ;;  %v211_v45 = vshrl.u32 %v1533_v26, 16  ;;  %v219_v47 = vshrl.u32 %v1544_v40, 16  ;;  %v215_v50 = vshll.u32 %v1544_v40, 16  ;;  %v1614_v31 = vld [vmem:[%s2083_s0 + $0x40] sm:$0xff]  }
   0xc   :  { %v316_v44 = vor.u32 %v315_v39, %v314_v38  ;;  %v313_v48 = vsel %vm302_vm1, %v308_v23, %v312_v37  ;;  %v1559_v49 = vrot.slane %v207_v41, 1  ;;  %v284_v51 = vrot.slane %v1533_v26, 1 }
   0xd   :  { %405 = vrot.lane.b32.xlu0 %v146_v35, %s1452_s7  ;;  %v286_v52 = vrot.slane %v1544_v40, 1  ;;  %v338_v53 = vrot.slane %v211_v45, 1  ;;  %v339_v54 = vrot.slane %v207_v41, 2  ;;  %v342_v55 = vrot.slane %v219_v47, 1 }
   0xe   :  { %407 = vrot.lane.b32.xlu1 %v154_v34, %s1452_s7  ;;  %v317_v56 = vsel %vm302_vm1, %v312_v37, %v316_v44  ;;  %v343_v57 = vrot.slane %v215_v50, 2  ;;  %v171_v58 = vshrl.u32 %v1555_v46, 16  ;;  %v273_v59 = vsel %vm266_vm0, %v270_v7, %v272_v42 }
   0xf   :  { %v213_v60 = vor.u32 %v211_v45, %v1559_v49  ;;  %v217_v61 = vrot.slane %v215_v50, 1  ;;  %v167_v62 = vshll.u32 %v1555_v46, 16  ;;  %v287_v63 = vsel %vm266_vm0, %v284_v51, %v286_v52 }
  0x10   :  { %v1578_v3 = vor.u32 %v339_v54, %v338_v53  ;;  %v344_v4 = vor.u32 %v343_v57, %v342_v55  ;;  %v318_v5 = vrot.slane %v171_v58, 1  ;;  %v165_v8 = vor.u32 %v163_v33, %v161_v32  ;;  %v1410_v53 = vld [vmem:[%s2084_s1 + $0x38] sm:$0xff]  }
  0x11   :  { %409 = vrot.lane.b32.xlu0 %v162_v43, %s1452_s7  ;;  %v319_v6 = vrot.slane %v167_v62, 2  ;;  %v218_v7 = vsel %vm134_vm2, %v213_v60, %v217_v61  ;;  %v169_v9 = vrot.slane %v167_v62, 1  ;;  %v227_v15 = vshrl.u32 %v1584_v11, 16 }
  0x12   :  { %473 = vrot.lane.b32.xlu1 %v313_v48, %s1451_s29  ;;  %v345_v12 = vsel %vm302_vm1, %v1578_v3, %v344_v4  ;;  %v274_v17 = vrot.slane %v1555_v46, 1  ;;  %v223_v18 = vshll.u32 %v1584_v11, 16  ;;  %v288_v20 = vrot.slane %v1584_v11, 1  ;;  %v1638_v48 = vld [vmem:[%s2083_s0 + $0x30] sm:$0xff]  }
  0x13   :  { %v320_v13 = vor.u32 %v319_v6, %v318_v5  ;;  %v170_v16 = vsel %vm134_vm2, %v165_v8, %v169_v9  ;;  %v346_v22 = vrot.slane %v227_v15, 1  ;;  %v179_v24 = vshrl.u32 %v1597_v19, 16 }
  0x14   :  { %v347_v23 = vrot.slane %v223_v18, 2  ;;  %v275_v25 = vsel %vm266_vm0, %v272_v42, %v274_v17  ;;  %v221_v27 = vor.u32 %v219_v47, %v217_v61  ;;  %v225_v28 = vrot.slane %v223_v18, 1 }
  0x15   :  { %475 = vrot.lane.b32.xlu0 %v317_v56, %s1451_s29  ;;  %v321_v21 = vsel %vm302_vm1, %v316_v44, %v320_v13  ;;  %v175_v29 = vshll.u32 %v1597_v19, 16  ;;  %v289_v32 = vsel %vm266_vm0, %v286_v52, %v288_v20  ;;  %v322_v34 = vrot.slane %v179_v24, 1 }
  0x16   :  { %442 = vrot.lane.b32.xlu1 %v273_v59, %s1450_s26  ;;  %v1621_v33 = vor.u32 %v347_v23, %v346_v22  ;;  %v226_v36 = vsel %vm134_vm2, %v221_v27, %v225_v28  ;;  %v173_v37 = vor.u32 %v171_v58, %v169_v9  ;;  %v276_v39 = vrot.slane %v1597_v19, 1 }
  0x17   :  { %v323_v35 = vrot.slane %v175_v29, 2  ;;  %v177_v38 = vrot.slane %v175_v29, 1  ;;  %v231_v41 = vshll.u32 %v1609_v30, 16  ;;  %v199_v42 = vshll.u32 %v1614_v31, 16 }
  0x18   :  { %v290_v43 = vrot.slane %v1609_v30, 1  ;;  %v235_v44 = vshrl.u32 %v1609_v30, 16  ;;  %v349_v45 = vsel %vm302_vm1, %v344_v4, %v1621_v33  ;;  %v282_v52 = vrot.slane %v1614_v31, 1 }
  0x19   :  { %456 = vrot.lane.b32.xlu0 %v287_v63, %s1450_s26  ;;  %v1633_v47 = vor.u32 %v323_v35, %v322_v34  ;;  %v1640_v50 = vrot.slane %v199_v42, 1  ;;  %v178_v54 = vsel %vm134_vm2, %v173_v37, %v177_v38  ;;  %v203_v55 = vshrl.u32 %v1614_v31, 16 }
  0x1a   :  { %423 = vrot.lane.b32.xlu1 %v218_v7, %s1452_s7  ;;  %v335_v56 = vrot.slane %v199_v42, 2  ;;  %v277_v57 = vsel %vm266_vm0, %v274_v17, %v276_v39  ;;  %v229_v58 = vor.u32 %v227_v15, %v225_v28  ;;  %v350_v59 = vrot.slane %v235_v44, 1 }
  0x1b   :  { %v351_v60 = vrot.slane %v231_v41, 2  ;;  %v334_v61 = vrot.slane %v203_v55, 1  ;;  %v205_v62 = vor.u32 %v203_v55, %v1640_v50  ;;  %v325_v63 = vsel %vm302_vm1, %v320_v13, %v1633_v47 }
  0x1c   :  { %v187_v4 = vshrl.u32 %v1638_v48, 16  ;;  %v1664_v5 = vsel %vm266_vm0, %v282_v52, %v284_v51  ;;  %v1666_v6 = vrot.slane %v231_v41, 1  ;;  %v183_v7 = vshll.u32 %v1638_v48, 16  ;;  %v1411_v51 = vld [vmem:[%s2084_s1 + $0x30] sm:$0xff]  }
  0x1d   :  { %489 = vrot.lane.b32.xlu0 %v345_v12, %s1451_s29  ;;  %v1669_v8 = vor.u32 %v335_v56, %v334_v61  ;;  %v1673_v9 = vsel %vm134_vm2, %v205_v62, %v1559_v49  ;;  %v1453_v12 = vmov 0   ;;  %v181_v13 = vor.u32 %v179_v24, %v177_v38 }
  0x1e   :  { %411 = vrot.lane.b32.xlu1 %v170_v16, %s1452_s7  ;;  %745 = vmatprep.subr.bf16.mxu0 %v1453_v12 }
  0x1f   :  { %1365 = vmatprep.subr.bf16.mxu1 %v1453_v12  ;;  %746 = vmatpush1.bf16.msra.mxu0 %v1410_v53 }
  0x20   :  { %1375 = vmatpush1.bf16.msra.mxu1 %v1410_v53 }
  0x21   :  { %477 = vrot.lane.b32.xlu0 %v321_v21, %s1451_s29 }
  0x22   :  { %444 = vrot.lane.b32.xlu1 %v275_v25, %s1450_s26 }
  0x25   :  { %458 = vrot.lane.b32.xlu0 %v289_v32, %s1450_s26 }
  0x26   :  { %425 = vrot.lane.b32.xlu1 %v226_v36, %s1452_s7 }
  0x29   :  { %491 = vrot.lane.b32.xlu0 %v349_v45, %s1451_s29 }
  0x2a   :  { %413 = vrot.lane.b32.xlu1 %v178_v54, %s1452_s7 }
  0x2b   :  { %10 = vsyncpa [#allocation3], 0  ;;  %v291_v49 = vsel %vm266_vm0, %v288_v20, %v290_v43  ;;  %v1686_v15 = vor.u32 %v351_v60, %v350_v59  ;;  %v1691_v16 = vsel %vm302_vm1, %v1669_v8, %v1578_v3  ;;  %747 = vmatprep.subr.bf16.mxu0 %v1453_v12  ;;  %v326_v17 = vrot.slane %v187_v4, 1  ;;  %1366 = vmatprep.subr.bf16.mxu1 %v1453_v12  ;;  %v1704_v3 = vld [vmem:[%s2083_s0 + $0x68] sm:$0xff]   ;;  %v1736_v42 = vld [vmem:[%s2083_s0 + $0x38] sm:$0xff]   ;;  %s1456_s19 = smov [#allocation2]  }
  0x2c   :  { %v327_v18 = vrot.slane %v183_v7, 2  ;;  %vm369_vm4 = vcmask 1045504   ;;  %v370_v20 = vrot.slane %v1492_v0, 2  ;;  %v234_v21 = vsel %vm134_vm2, %v229_v58, %v1666_v6  ;;  %748 = vmatpush1.bf16.msra.mxu0 %v1411_v51  ;;  %v1412_v25 = vld [vmem:[%s2084_s1 + $0x28] sm:$0xff]   ;;  %1376 = vmatpush1.bf16.msra.mxu1 %v1411_v51  ;;  %v1413_v45 = vld [vmem:[%s2084_s1 + $0x20] sm:$0xff]   ;;  %s1274_s20 = sshll.u32 %s1456_s19, 4  ;;  %s1275_s20 = int_to_ptr.vmem [resolvable:$true] %s1274_s20 }
  0x2d   :  { %479 = vrot.lane.b32.xlu0 %v325_v63, %s1451_s29  ;;  %v185_v22 = vrot.slane %v183_v7, 1  ;;  %v371_v23 = vrot.slane %v1497_v1, 2  ;;  %v373_v24 = vrot.slane %v1502_v2, 2  ;;  %v387_v27 = vrot.slane %v1533_v26, 2  ;;  %749 = vmatprep.subr.bf16.mxu0 %v1453_v12  ;;  %v1414_v63 = vld [vmem:[%s2084_s1 + $0x18] sm:$0xff]   ;;  %s1428_s21 = scalar_lea.vmem %s1275_s20, 256  ;;  %p1433_p1 = scmp.lt.s32.totalorder %s1275_s20, %s1275_s20 }
  0x2e   :  { %446 = vrot.lane.b32.xlu1 %v277_v57, %s1450_s26  ;;  %v353_v28 = vsel %vm302_vm1, %v1621_v33, %v1686_v15  ;;  %v389_v34 = vrot.slane %v1544_v40, 2  ;;  %v1725_v35 = vor.u32 %v327_v18, %v326_v17  ;;  %v243_v36 = vshrl.u32 %v1704_v3, 16  ;;  %1367 = vmatprep.subr.bf16.mxu1 %v1453_v12  ;;  %v1787_v17 = vld [vmem:[%s2083_s0 + $0x70] sm:$0xff]   ;;  %p1429_p0 = scmp.ne.s32.totalorder %s1275_s20, %s1428_s21  ;;  %p1434_p2 = scmp.lt.s32.totalorder %s1428_s21, %s1428_s21 }
  0x2f   :  { %v372_v29 = vsel %vm369_vm4, %v370_v20, %v371_v23  ;;  %v1721_v32 = vsel %vm369_vm4, %v371_v23, %v373_v24  ;;  %vm503_vm5 = vcmask 261120   ;;  %v391_v33 = vrot.slane %v1584_v11, 2 }
  0x30   :  { %v186_v37 = vsel %vm134_vm2, %v181_v13, %v185_v22  ;;  %v278_v38 = vrot.slane %v1638_v48, 1  ;;  %v239_v41 = vshll.u32 %v1704_v3, 16  ;;  %1311 = vmatprep.mubr.msk.bf16.mxu0 %vm503_vm5, %v372_v29  ;;  %750 = vmatpush1.bf16.msra.mxu0 %v1412_v25  ;;  %v390_v53 = vsel %vm369_vm4, %v387_v27, %v389_v34  ;;  %p1435_p3 = por %p1434_p2, %p1433_p1 }
  0x31   :  { %460 = vrot.lane.b32.xlu0 %v291_v49, %s1450_s26  ;;  %1377 = vmatpush1.bf16.msra.mxu1 %v1412_v25  ;;  %v1748_v54 = vsel %vm369_vm4, %v389_v34, %v391_v33  ;;  %v292_v55 = vrot.slane %v1704_v3, 1  ;;  %v329_v56 = vsel %vm302_vm1, %v1633_v47, %v1725_v35  ;;  %v354_v57 = vrot.slane %v243_v36, 1  ;;  %v1416_v25 = vld [vmem:[%s2084_s1 + $0x8] sm:$0xff]  }
  0x32   :  { %427 = vrot.lane.b32.xlu1 %v234_v21, %s1452_s7  ;;  %751 = vmatprep.subr.bf16.mxu0 %v1453_v12  ;;  %v355_v58 = vrot.slane %v239_v41, 2  ;;  %v195_v59 = vshrl.u32 %v1736_v42, 16  ;;  %v279_v60 = vsel %vm266_vm0, %v276_v39, %v278_v38  ;;  %v237_v61 = vor.u32 %v235_v44, %v1666_v6  ;;  %p1436_p4 = pnand %p1435_p3, %p1429_p0 }
  0x33   :  { %1368 = vmatprep.subr.bf16.mxu1 %v1453_v12  ;;  %v241_v62 = vrot.slane %v239_v41, 1  ;;  %v191_v47 = vshll.u32 %v1736_v42, 16  ;;  %1320 = vmatprep.mubr.msk.bf16.mxu1 %vm503_vm5, %v390_v53  ;;  %v293_v39 = vsel %vm266_vm0, %v290_v43, %v292_v55  ;;  %v189_v51 = vor.u32 %v187_v4, %v185_v22  ;;  %v1415_v43 = vld [vmem:[%s2084_s1 + $0x10] sm:$0xff]   ;;  %v1417_v53 = vld [vmem:[%s2084_s1] sm:$0xff]  }
  0x34   :  { %752 = vmatpush1.bf16.msra.mxu0 %v1413_v45  ;;  %v356_v44 = vor.u32 %v355_v58, %v354_v57  ;;  %v330_v6 = vrot.slane %v195_v59, 1  ;;  %v251_v20 = vshrl.u32 %v1787_v17, 16  ;;  %v280_v22 = vrot.slane %v1736_v42, 1  ;;  %v1829_v57 = vld [vmem:[%s2083_s0 + $0x78] sm:$0xff]   ;;  %v1418_v58 = vld [vmem:[%s2084_s1 + $0x48] sm:$0xff]  }
  0x35   :  { %493 = vrot.lane.b32.xlu0 %v353_v28, %s1451_s29  ;;  %1378 = vmatpush1.bf16.msra.mxu1 %v1413_v45  ;;  %v331_v7 = vrot.slane %v191_v47, 2  ;;  %v242_v13 = vsel %vm134_vm2, %v237_v61, %v241_v62  ;;  %v193_v49 = vrot.slane %v191_v47, 1  ;;  %v247_v23 = vshll.u32 %v1787_v17, 16 }
  0x36   :  { %415 = vrot.lane.b32.xlu1 %v186_v37, %s1452_s7  ;;  %753 = vmatprep.subr.bf16.mxu0 %v1453_v12  ;;  %v357_v4 = vsel %vm302_vm1, %v1686_v15, %v356_v44  ;;  %v294_v28 = vrot.slane %v1787_v17, 1  ;;  %v358_v29 = vrot.slane %v251_v20, 1  ;;  %v281_v37 = vsel %vm266_vm0, %v278_v38, %v280_v22 }
  0x37   :  { %1369 = vmatprep.subr.bf16.mxu1 %v1453_v12  ;;  %v332_v18 = vor.u32 %v331_v7, %v330_v6  ;;  %v194_v21 = vsel %vm134_vm2, %v189_v51, %v193_v49  ;;  %v359_v34 = vrot.slane %v247_v23, 2  ;;  %v245_v41 = vor.u32 %v243_v36, %v241_v62  ;;  %v1419_v62 = vld [vmem:[%s2084_s1 + $0x40] sm:$0xff]  }
  0x38   :  { %754 = vmatpush1.bf16.msra.mxu0 %v1414_v63  ;;  %v249_v45 = vrot.slane %v247_v23, 1  ;;  %v197_v38 = vor.u32 %v195_v59, %v193_v49  ;;  %v259_v59 = vshrl.u32 %v1829_v57, 16  ;;  %v255_v61 = vshll.u32 %v1829_v57, 16 }
  0x39   :  { %481 = vrot.lane.b32.xlu0 %v329_v56, %s1451_s29  ;;  %1379 = vmatpush1.bf16.msra.mxu1 %v1414_v63  ;;  %v333_v15 = vsel %vm302_vm1, %v1725_v35, %v332_v18  ;;  %v295_v35 = vsel %vm266_vm0, %v292_v55, %v294_v28  ;;  %v360_v56 = vor.u32 %v359_v34, %v358_v29  ;;  %v296_v63 = vrot.slane %v1829_v57, 1 }
  0x3a   :  { %448 = vrot.lane.b32.xlu1 %v279_v60, %s1450_s26  ;;  %755 = vmatprep.subr.bf16.mxu0 %v1453_v12  ;;  %v250_v36 = vsel %vm134_vm2, %v245_v41, %v249_v45  ;;  %v202_v60 = vsel %vm134_vm2, %v197_v38, %v1640_v50  ;;  %v337_v47 = vsel %vm302_vm1, %v332_v18, %v1669_v8  ;;  %v362_v50 = vrot.slane %v259_v59, 1 }
  0x3b   :  { %1370 = vmatprep.subr.bf16.mxu1 %v1453_v12  ;;  %v361_v55 = vsel %vm302_vm1, %v356_v44, %v360_v56  ;;  %v283_v44 = vsel %vm266_vm0, %v280_v22, %v282_v52  ;;  %v253_v6 = vor.u32 %v251_v20, %v249_v45  ;;  %v257_v7 = vrot.slane %v255_v61, 1 }
  0x3c   :  { %756 = vmatpush1.bf16.msra.mxu0 %v1415_v43  ;;  %vm263_vm6 = vcmask 1047552   ;;  %vm536_vm8 = vcmask 523264   ;;  %vm569_vm9 = vcmask 785408   ;;  %vm1455_vm10 = vmmov 0  }
  0x3d   :  { %462 = vrot.lane.b32.xlu0 %v293_v39, %s1450_s26  ;;  %1380 = vmatpush1.bf16.msra.mxu1 %v1415_v43  ;;  %v363_v39 = vrot.slane %v255_v61, 2  ;;  %v258_v51 = vsel %vm134_vm2, %v253_v6, %v257_v7  ;;  %vm264_vm7 = vmand %vm263_vm6, %vm134_vm2  ;;  %v301_v43 = vsel %vm266_vm0, %v296_v63, 0  ;;  %v379_v61 = vrot.slane %v1597_v19, 2 }
  0x3e   :  { %429 = vrot.lane.b32.xlu1 %v242_v13, %s1452_s7  ;;  %757 = vmatprep.subr.bf16.mxu0 %v1453_v12  ;;  %v385_v13 = vrot.slane %v1614_v31, 2  ;;  %vm1155_vm11 = vcmask 1041409   ;;  %vm1157_vm12 = vcmask 1042434   ;;  %vm1159_vm13 = vcmask 1043459  }
  0x3f   :  { %1371 = vmatprep.subr.bf16.mxu1 %v1453_v12  ;;  %v364_v52 = vor.u32 %v363_v39, %v362_v50  ;;  %v393_v50 = vrot.slane %v1609_v30, 2  ;;  %vm1161_vm14 = vcmask 1044484   ;;  %vm1163_vm15 = vcmask 1045509  }
  0x40   :  { %758 = vmatpush1.bf16.msra.mxu0 %v1416_v25  ;;  %v1863_v8 = vsel %vm369_vm4, %v385_v13, %v387_v27  ;;  %v261_v27 = vor.u32 %v259_v59, %v257_v7 }
  0x41   :  { %495 = vrot.lane.b32.xlu0 %v357_v4, %s1451_s29  ;;  %1381 = vmatpush1.bf16.msra.mxu1 %v1416_v25  ;;  %v365_v49 = vsel %vm302_vm1, %v360_v56, %v364_v52  ;;  %v368_v18 = vsel %vm1519_vm3, %v364_v52, 0  ;;  %v377_v56 = vrot.slane %v1555_v46, 2  ;;  %vm1167_vm1 = vcmask 1047559  }
  0x42   :  { %417 = vrot.lane.b32.xlu1 %v194_v21, %s1452_s7  ;;  %759 = vmatprep.subr.bf16.mxu0 %v1453_v12  ;;  %v265_v4 = vsel %vm264_vm7, %v261_v27, 0 }
  0x43   :  { %1372 = vmatprep.subr.bf16.mxu1 %v1453_v12 }
  0x44   :  { %760 = vmatpush1.bf16.msra.mxu0 %v1417_v53 }
  0x45   :  { %483 = vrot.lane.b32.xlu0 %v333_v15, %s1451_s29  ;;  %1382 = vmatpush1.bf16.msra.mxu1 %v1417_v53 }
  0x46   :  { %450 = vrot.lane.b32.xlu1 %v281_v37, %s1450_s26  ;;  %773 = vmatprep.subr.bf16.mxu0 %v1453_v12 }
  0x47   :  { %1373 = vmatprep.subr.bf16.mxu1 %v1453_v12 }
  0x48   :  { %774 = vmatpush2.bf16.msra.mxu0 %v1418_v58 }
  0x49   :  { %464 = vrot.lane.b32.xlu0 %v295_v35, %s1450_s26  ;;  %1383 = vmatpush2.bf16.msra.mxu1 %v1418_v58 }
  0x4a   :  { %431 = vrot.lane.b32.xlu1 %v250_v36, %s1452_s7  ;;  %775 = vmatprep.subr.bf16.mxu0 %v1453_v12 }
  0x4b   :  { %1374 = vmatprep.subr.bf16.mxu1 %v1453_v12  ;;  %v297_v12 = vsel %vm266_vm0, %v294_v28, %v296_v63  ;;  %v375_v28 = vrot.slane %v1514_v10, 2  ;;  %vm1165_vm0 = vcmask 1046534  }
  0x4c   :  { %776 = vmatpush2.bf16.msra.mxu0 %v1419_v62 }
  0x4d   :  { %497 = vrot.lane.b32.xlu0 %v361_v55, %s1451_s29  ;;  %1384 = vmatpush2.bf16.msra.mxu1 %v1419_v62  ;;  %v378_v59 = vsel %vm369_vm4, %v375_v28, %v377_v56 }
  0x4e   :  { %419 = vrot.lane.b32.xlu1 %v202_v60, %s1452_s7 }
  0x51   :  { %485 = vrot.lane.b32.xlu0 %v337_v47, %s1451_s29 }
  0x52   :  { %452 = vrot.lane.b32.xlu1 %v283_v44, %s1450_s26 }
  0x55   :  { %466 = vrot.lane.b32.xlu0 %v297_v12, %s1450_s26 }
  0x56   :  { %433 = vrot.lane.b32.xlu1 %v258_v51, %s1452_s7 }
  0x59   :  { %499 = vrot.lane.b32.xlu0 %v365_v49, %s1451_s29 }
  0x5a   :  { %421 = vrot.lane.b32.xlu1 %v1673_v9, %s1452_s7 }
  0x5d   :  { %487 = vrot.lane.b32.xlu0 %v1691_v16, %s1451_s29 }
  0x5e   :  { %454 = vrot.lane.b32.xlu1 %v1664_v5, %s1450_s26 }
  0x61   :  { %468 = vrot.lane.b32.xlu0 %v301_v43, %s1450_s26 }
  0x62   :  { %435 = vrot.lane.b32.xlu1 %v265_v4, %s1452_s7 }
  0x66   :  { %501 = vrot.lane.b32.xlu1 %v368_v18, %s1451_s29 }
  0x77   :  { %v439_v9 = vpop.permute.xlu0 %438 }
  0x7b   :  { %v441_v20 = vpop.permute.xlu0 %440 }
  0x7c   :  { %v472_v21 = vpop.permute.xlu1 %471 }
  0x7f   :  { %v406_v16 = vpop.permute.xlu0 %405 }
  0x80   :  { %v408_v22 = vpop.permute.xlu1 %407  ;;  %v505_v5 = vsel %vm503_vm5, %v1492_v0, %v406_v16  ;;  %v376_v0 = vsel %vm369_vm4, %v373_v24, %v375_v28 }
  0x81   :  { %v538_v23 = vsel %vm536_vm8, %v505_v5, %v439_v9  ;;  %v507_v29 = vsel %vm503_vm5, %v1497_v1, %v408_v22 }
  0x82   :  { %v571_v25 = vsel %vm569_vm9, %v538_v23, %v472_v21  ;;  %v540_v41 = vsel %vm536_vm8, %v507_v29, %v441_v20  ;;  %v395_v20 = vrot.slane %v1704_v3, 2 }
  0x83   :  { %778 = vmatmul.mubr.bf16.vlgmr.msra.gmra.mxu0 %v571_v25  ;;  %v410_v15 = vpop.permute.xlu0 %409 }
  0x84   :  { %v474_v14 = vpop.permute.xlu1 %473  ;;  %1312 = vmatprep.mubr.msk.bf16.mxu0 %vm503_vm5, %v1721_v32  ;;  %v509_v32 = vsel %vm503_vm5, %v1502_v2, %v410_v15  ;;  %v396_v5 = vsel %vm369_vm4, %v393_v50, %v395_v20  ;;  %v383_v15 = vrot.slane %v1736_v42, 2 }
  0x85   :  { %v574_v45 = vsel %vm569_vm9, %v540_v41, %v474_v14 }
  0x87   :  { %v476_v34 = vpop.permute.xlu0 %475 }
  0x88   :  { %v443_v37 = vpop.permute.xlu1 %442 }
  0x89   :  { %v542_v36 = vsel %vm536_vm8, %v509_v32, %v443_v37 }
  0x8a   :  { %v577_v2 = vsel %vm569_vm9, %v542_v36, %v476_v34 }
  0x8b   :  { %786 = vmatmul.mubr.bf16.gmra.mxu0 %v574_v45  ;;  %v457_v53 = vpop.permute.xlu0 %456 }
  0x8c   :  { %v424_v35 = vpop.permute.xlu1 %423  ;;  %1313 = vmatprep.mubr.msk.bf16.mxu0 %vm503_vm5, %v376_v0  ;;  %v397_v0 = vrot.slane %v1787_v17, 2 }
  0x8d   :  { %v523_v1 = vsel %vm503_vm5, %v1533_v26, %v424_v35 }
  0x8e   :  { %v556_v38 = vsel %vm536_vm8, %v523_v1, %v457_v53  ;;  %v398_v35 = vsel %vm369_vm4, %v395_v20, %v397_v0 }
  0x8f   :  { %v490_v24 = vpop.permute.xlu0 %489 }
  0x90   :  { %v412_v58 = vpop.permute.xlu1 %411  ;;  %v598_v55 = vsel %vm569_vm9, %v556_v38, %v490_v24 }
  0x91   :  { %850 = vmatmul.mubr.bf16.vlgmr.msra.gmra.mxu1 %v598_v55  ;;  %v511_v62 = vsel %vm503_vm5, %v1514_v10, %v412_v58  ;;  %v394_v10 = vsel %vm369_vm4, %v391_v33, %v393_v50 }
  0x92   :  { %1321 = vmatprep.mubr.msk.bf16.mxu1 %vm503_vm5, %v1748_v54  ;;  %v380_v54 = vsel %vm369_vm4, %v377_v56, %v379_v61 }
  0x93   :  { %794 = vmatmul.mubr.bf16.gmra.mxu0 %v577_v2  ;;  %v478_v26 = vpop.permute.xlu0 %477  ;;  %v399_v2 = vrot.slane %v1829_v57, 2 }
  0x94   :  { %v445_v60 = vpop.permute.xlu1 %444  ;;  %1314 = vmatprep.mubr.msk.bf16.mxu0 %vm503_vm5, %v378_v59 }
  0x95   :  { %v544_v47 = vsel %vm536_vm8, %v511_v62, %v445_v60  ;;  %v400_v62 = vsel %vm369_vm4, %v397_v0, %v399_v2 }
  0x96   :  { %v580_v6 = vsel %vm569_vm9, %v544_v47, %v478_v26 }
  0x97   :  { %v459_v63 = vpop.permute.xlu0 %458 }
  0x98   :  { %v426_v39 = vpop.permute.xlu1 %425 }
  0x99   :  { %v525_v44 = vsel %vm503_vm5, %v1544_v40, %v426_v39  ;;  %v381_v40 = vrot.slane %v1638_v48, 2 }
  0x9a   :  { %v558_v7 = vsel %vm536_vm8, %v525_v44, %v459_v63 }
  0x9b   :  { %802 = vmatmul.mubr.bf16.gmra.mxu0 %v580_v6  ;;  %v492_v12 = vpop.permute.xlu0 %491  ;;  %v382_v18 = vsel %vm369_vm4, %v379_v61, %v381_v40  ;;  %v384_v34 = vsel %vm369_vm4, %v381_v40, %v383_v15 }
  0x9c   :  { %v414_v52 = vpop.permute.xlu1 %413  ;;  %v601_v51 = vsel %vm569_vm9, %v558_v7, %v492_v12  ;;  %1315 = vmatprep.mubr.msk.bf16.mxu0 %vm503_vm5, %v380_v54 }
  0x9d   :  { %858 = vmatmul.mubr.bf16.gmra.mxu1 %v601_v51  ;;  %v513_v27 = vsel %vm503_vm5, %v1555_v46, %v414_v52  ;;  %v403_v52 = vsel %vm369_vm4, %v399_v2, 0 }
  0x9e   :  { %1322 = vmatprep.mubr.msk.bf16.mxu1 %vm503_vm5, %v394_v10 }
  0x9f   :  { %v480_v49 = vpop.permute.xlu0 %479 }
  0xa0   :  { %v447_v43 = vpop.permute.xlu1 %446 }
  0xa1   :  { %v546_v4 = vsel %vm536_vm8, %v513_v27, %v447_v43 }
  0xa2   :  { %v583_v33 = vsel %vm569_vm9, %v546_v4, %v480_v49 }
  0xa3   :  { %810 = vmatmul.mubr.bf16.gmra.mxu0 %v583_v33  ;;  %v461_v9 = vpop.permute.xlu0 %460 }
  0xa4   :  { %v428_v21 = vpop.permute.xlu1 %427  ;;  %1316 = vmatprep.mubr.msk.bf16.mxu0 %vm503_vm5, %v382_v18 }
  0xa5   :  { %v527_v16 = vsel %vm503_vm5, %v1584_v11, %v428_v21  ;;  %v1454_v21 = vmov 0.0  }
  0xa6   :  { %v560_v22 = vsel %vm536_vm8, %v527_v16, %v461_v9  ;;  %1345 = vmatprep.subr.bf16.mxu1 %v1454_v21  ;;  %v1421_v16 = vld [vmem:[%s2086_s3 + $0x30] sm:$0xff]  }
  0xa7   :  { %v494_v46 = vpop.permute.xlu0 %493 }
  0xa8   :  { %v416_v23 = vpop.permute.xlu1 %415  ;;  %v604_v25 = vsel %vm569_vm9, %v560_v22, %v494_v46  ;;  %v1423_v22 = vld [vmem:[%s2086_s3 + $0x20] sm:$0xff]   ;;  %v1424_v46 = vld [vmem:[%s2086_s3 + $0x18] sm:$0xff]  }
  0xa9   :  { %866 = vmatmul.mubr.bf16.gmra.mxu1 %v604_v25  ;;  %v515_v28 = vsel %vm503_vm5, %v1597_v19, %v416_v23  ;;  %v1426_v23 = vld [vmem:[%s2086_s3 + $0x8] sm:$0xff]   ;;  %v1427_v25 = vld [vmem:[%s2086_s3] sm:$0xff]  }
  0xaa   :  { %1323 = vmatprep.mubr.msk.bf16.mxu1 %vm503_vm5, %v396_v5  ;;  %v1425_v5 = vld [vmem:[%s2086_s3 + $0x10] sm:$0xff]  }
  0xab   :  { %v482_v14 = vpop.permute.xlu0 %481 }
  0xac   :  { %v449_v29 = vpop.permute.xlu1 %448 }
  0xad   :  { %v548_v11 = vsel %vm536_vm8, %v515_v28, %v449_v29  ;;  %v2024_v29 = vld [vmem:[%s2085_s2 + $0x8] sm:$0xff] }
  0xae   :  { %v586_v37 = vsel %vm569_vm9, %v548_v11, %v482_v14  ;;  %v2019_v14 = vld [vmem:[%s2085_s2] sm:$0xff] }
  0xaf   :  { %818 = vmatmul.mubr.bf16.gmra.mxu0 %v586_v37  ;;  %v463_v41 = vpop.permute.xlu0 %462 }
  0xb0   :  { %v430_v45 = vpop.permute.xlu1 %429  ;;  %1317 = vmatprep.mubr.msk.bf16.mxu0 %vm503_vm5, %v384_v34 }
  0xb1   :  { %v529_v53 = vsel %vm503_vm5, %v1609_v30, %v430_v45  ;;  %v386_v30 = vsel %vm369_vm4, %v383_v15, %v385_v13 }
  0xb2   :  { %v562_v32 = vsel %vm536_vm8, %v529_v53, %v463_v41 }
  0xb3   :  { %v496_v19 = vpop.permute.xlu0 %495 }
  0xb4   :  { %v418_v1 = vpop.permute.xlu1 %417  ;;  %v607_v56 = vsel %vm569_vm9, %v562_v32, %v496_v19 }
  0xb5   :  { %874 = vmatmul.mubr.bf16.gmra.mxu1 %v607_v56  ;;  %v517_v38 = vsel %vm503_vm5, %v1638_v48, %v418_v1 }
  0xb6   :  { %1324 = vmatprep.mubr.msk.bf16.mxu1 %vm503_vm5, %v398_v35 }
  0xb7   :  { %v484_v36 = vpop.permute.xlu0 %483 }
  0xb8   :  { %v451_v24 = vpop.permute.xlu1 %450 }
  0xb9   :  { %v550_v58 = vsel %vm536_vm8, %v517_v38, %v451_v24 }
  0xba   :  { %v589_v55 = vsel %vm569_vm9, %v550_v58, %v484_v36 }
  0xbb   :  { %826 = vmatmul.mubr.bf16.gmra.mxu0 %v589_v55  ;;  %v465_v59 = vpop.permute.xlu0 %464 }
  0xbc   :  { %v432_v26 = vpop.permute.xlu1 %431  ;;  %1318 = vmatprep.mubr.msk.bf16.mxu0 %vm503_vm5, %v386_v30 }
  0xbd   :  { %v531_v60 = vsel %vm503_vm5, %v1704_v3, %v432_v26 }
  0xbe   :  { %v564_v48 = vsel %vm536_vm8, %v531_v60, %v465_v59 }
  0xbf   :  { %v498_v61 = vpop.permute.xlu0 %497 }
  0xc0   :  { %v420_v47 = vpop.permute.xlu1 %419  ;;  %v610_v13 = vsel %vm569_vm9, %v564_v48, %v498_v61 }
  0xc1   :  { %882 = vmatmul.mubr.bf16.gmra.mxu1 %v610_v13  ;;  %v519_v50 = vsel %vm503_vm5, %v1736_v42, %v420_v47 }
  0xc2   :  { %1325 = vmatprep.mubr.msk.bf16.mxu1 %vm503_vm5, %v400_v62 }
  0xc3   :  { %v486_v63 = vpop.permute.xlu0 %485 }
  0xc4   :  { %v453_v39 = vpop.permute.xlu1 %452 }
  0xc5   :  { %v552_v44 = vsel %vm536_vm8, %v519_v50, %v453_v39 }
  0xc6   :  { %v592_v3 = vsel %vm569_vm9, %v552_v44, %v486_v63 }
  0xc7   :  { %834 = vmatmul.mubr.bf16.gmra.mxu0 %v592_v3  ;;  %v467_v54 = vpop.permute.xlu0 %466 }
  0xc8   :  { %v434_v6 = vpop.permute.xlu1 %433  ;;  %1319 = vmatprep.mubr.msk.bf16.mxu0 %vm503_vm5, %v1863_v8 }
  0xc9   :  { %v533_v7 = vsel %vm503_vm5, %v1787_v17, %v434_v6 }
  0xca   :  { %v566_v12 = vsel %vm536_vm8, %v533_v7, %v467_v54 }
  0xcb   :  { %v500_v10 = vpop.permute.xlu0 %499 }
  0xcc   :  { %v422_v42 = vpop.permute.xlu1 %421  ;;  %v613_v51 = vsel %vm569_vm9, %v566_v12, %v500_v10 }
  0xcd   :  { %890 = vmatmul.mubr.bf16.gmra.mxu1 %v613_v51  ;;  %v521_v49 = vsel %vm503_vm5, %v1614_v31, %v422_v42  ;;  %v1420_v31 = vld [vmem:[%s2086_s3 + $0x38] sm:$0xff]  }
  0xce   :  { %1326 = vmatprep.mubr.msk.bf16.mxu1 %vm503_vm5, %v403_v52  ;;  %1346 = vmatpush3.bf16.msra.mxu1 %v1420_v31 }
  0xcf   :  { %v488_v40 = vpop.permute.xlu0 %487  ;;  %1347 = vmatprep.subr.bf16.mxu1 %v1454_v21 }
  0xd0   :  { %v455_v27 = vpop.permute.xlu1 %454 }
  0xd1   :  { %v554_v8 = vsel %vm536_vm8, %v521_v49, %v455_v27 }
  0xd2   :  { %v595_v17 = vsel %vm569_vm9, %v554_v8, %v488_v40  ;;  %1348 = vmatpush3.bf16.msra.mxu1 %v1421_v16 }
  0xd3   :  { %842 = vmatmul.mubr.bf16.gmra.mxu0 %v595_v17  ;;  %v469_v18 = vpop.permute.xlu0 %468  ;;  %1349 = vmatprep.subr.bf16.mxu1 %v1454_v21 }
  0xd4   :  { %v436_v43 = vpop.permute.xlu1 %435 }
  0xd5   :  { %v535_v4 = vsel %vm503_vm5, %v1829_v57, %v436_v43  ;;  %v1422_v57 = vld [vmem:[%s2086_s3 + $0x28] sm:$0xff]  }
  0xd6   :  { %v568_v33 = vsel %vm536_vm8, %v535_v4, %v469_v18  ;;  %1350 = vmatpush3.bf16.msra.mxu1 %v1422_v57 }
  0xd7   :  { %1351 = vmatprep.subr.bf16.mxu1 %v1454_v21 }
  0xd8   :  { %v502_v9 = vpop.permute.xlu1 %501 }
  0xd9   :  { %v616_v20 = vsel %vm569_vm9, %v568_v33, %v502_v9 }
  0xda   :  { %898 = vmatmul.mubr.bf16.gmra.mxu1 %v616_v20 }
  0xdb   :  { %1352 = vmatpush3.bf16.msra.mxu1 %v1423_v22  ;;  %1361 = vmatprep.mubr.msk.bf16.mxu1 %vm1455_vm10, %v1454_v21 }
  0xdc   :  { %1353 = vmatprep.subr.bf16.mxu1 %v1454_v21 }
  0xdf   :  { %1354 = vmatpush3.bf16.msra.mxu1 %v1424_v46 }
  0xe0   :  { %1355 = vmatprep.subr.bf16.mxu1 %v1454_v21 }
  0xe3   :  { %1356 = vmatpush3.bf16.msra.mxu1 %v1425_v5 }
  0xe4   :  { %1357 = vmatprep.subr.bf16.mxu1 %v1454_v21 }
  0xe7   :  { %1358 = vmatpush3.bf16.msra.mxu1 %v1426_v23 }
  0xe8   :  { %1359 = vmatprep.subr.bf16.mxu1 %v1454_v21 }
  0xeb   :  { %1360 = vmatpush3.bf16.msra.mxu1 %v1427_v25 }
 0x143   :  { %v779_v15 = vpop.f32.mrf.mxu0 }
 0x144   :  { %v908_v11 = vadd.f32 %v2019_v14, %v779_v15 }
 0x145   :  { %v781_v28 = vpop.f32.mrf.mxu0 }
 0x146   :  { %v940_v0 = vmax.f32 %v908_v11, 0.0 }
 0x147   :  { %v782_v34 = vpop.f32.mrf.mxu0 }
 0x148   :  { %v909_v37 = vadd.f32 %v2024_v29, %v782_v34 }
 0x149   :  { %v784_v41 = vpop.f32.mrf.mxu0 }
 0x14a   :  { %v941_v45 = vmax.f32 %v909_v37, 0.0 }
 0x14b   :  { %v787_v53 = vpop.f32.mrf.mxu0 }
 0x14c   :  { %v972_v32 = vmax.f32 %v940_v0, %v941_v45  ;;  %v910_v1 = vadd.f32 %v2019_v14, %v787_v53 }
 0x14d   :  { %v789_v19 = vpop.f32.mrf.mxu0 }
 0x14e   :  { %v973_v35 = vrot.slane %v972_v32, 4  ;;  %v942_v55 = vmax.f32 %v910_v1, 0.0 }
 0x14f   :  { %v790_v56 = vpop.f32.mrf.mxu0 }
 0x150   :  { %v974_v36 = vmax.f32 %v972_v32, %v973_v35  ;;  %v911_v38 = vadd.f32 %v2024_v29, %v790_v56 }
 0x151   :  { %v792_v24 = vpop.f32.mrf.mxu0  ;;  %v851_v58 = vpop.f32.mrf.mxu1 }
 0x152   :  { %v975_v30 = vrot.slane %v974_v36, 2  ;;  %v943_v59 = vmax.f32 %v911_v38, 0.0  ;;  %v926_v2 = vadd.f32 %v2019_v14, %v851_v58 }
 0x153   :  { %v795_v26 = vpop.f32.mrf.mxu0  ;;  %v853_v60 = vpop.f32.mrf.mxu1 }
 0x154   :  { %v976_v48 = vmax.f32 %v974_v36, %v975_v30  ;;  %v979_v61 = vmax.f32 %v942_v55, %v943_v59  ;;  %v912_v63 = vadd.f32 %v2019_v14, %v795_v26  ;;  %v958_v39 = vmax.f32 %v926_v2, 0.0 }
 0x155   :  { %v797_v62 = vpop.f32.mrf.mxu0  ;;  %v854_v47 = vpop.f32.mrf.mxu1 }
 0x156   :  { %v980_v13 = vrot.slane %v979_v61, 4  ;;  %v927_v50 = vadd.f32 %v2024_v29, %v854_v47  ;;  %v977_v54 = vrot.slane %v976_v48, 1  ;;  %v944_v42 = vmax.f32 %v912_v63, 0.0 }
 0x157   :  { %v798_v44 = vpop.f32.mrf.mxu0  ;;  %v856_v3 = vpop.f32.mrf.mxu1 }
 0x158   :  { %v981_v6 = vmax.f32 %v979_v61, %v980_v13  ;;  %v959_v7 = vmax.f32 %v927_v50, 0.0  ;;  %v913_v12 = vadd.f32 %v2024_v29, %v798_v44  ;;  %v978_v27 = vmax.f32 %v976_v48, %v977_v54 }
 0x159   :  { %v800_v10 = vpop.f32.mrf.mxu0 }
 0x15a   :  { %v982_v52 = vrot.slane %v981_v6, 2  ;;  %v2034_v51 = vmax.f32 %v958_v39, %v959_v7  ;;  %v945_v40 = vmax.f32 %v913_v12, 0.0  ;;  %v1084_v31 = vpack.c.bf16 %v978_v27, %v978_v27 }
 0x15b   :  { %v803_v49 = vpop.f32.mrf.mxu0 }
 0x15c   :  { %v983_v8 = vmax.f32 %v981_v6, %v982_v52  ;;  %v986_v17 = vmax.f32 %v944_v42, %v945_v40  ;;  %v1139_v15 = vunpack.c.l.b16 %v1084_v31  ;;  %v914_v39 = vadd.f32 %v2019_v14, %v803_v49 }
 0x15d   :  { %v805_v43 = vpop.f32.mrf.mxu0  ;;  %v859_v4 = vpop.f32.mrf.mxu1  ;;  %v1036_v12 = vrot.slane %v2034_v51, 4 }
 0x15e   :  { %v984_v18 = vrot.slane %v983_v8, 1  ;;  %v987_v33 = vrot.slane %v986_v17, 4  ;;  %v928_v3 = vadd.f32 %v2019_v14, %v859_v4  ;;  %v946_v42 = vmax.f32 %v914_v39, 0.0 }
 0x15f   :  { %v806_v9 = vpop.f32.mrf.mxu0  ;;  %v861_v20 = vpop.f32.mrf.mxu1 }
 0x160   :  { %v985_v21 = vmax.f32 %v983_v8, %v984_v18  ;;  %v988_v16 = vmax.f32 %v986_v17, %v987_v33  ;;  %v915_v47 = vadd.f32 %v2024_v29, %v806_v9  ;;  %v960_v43 = vmax.f32 %v928_v3, 0.0 }
 0x161   :  { %v808_v57 = vpop.f32.mrf.mxu0  ;;  %v862_v22 = vpop.f32.mrf.mxu1 }
 0x162   :  { %v1085_v46 = vpack.c.bf16 %v985_v21, %v985_v21  ;;  %v989_v5 = vrot.slane %v988_v16, 2  ;;  %v929_v50 = vadd.f32 %v2024_v29, %v862_v22  ;;  %v947_v54 = vmax.f32 %v915_v47, 0.0 }
 0x163   :  { %v811_v23 = vpop.f32.mrf.mxu0  ;;  %v864_v25 = vpop.f32.mrf.mxu1 }
 0x164   :  { %v1140_v28 = vunpack.c.l.b16 %v1085_v46  ;;  %v990_v11 = vmax.f32 %v988_v16, %v989_v5  ;;  %v961_v10 = vmax.f32 %v929_v50, 0.0  ;;  %v916_v40 = vadd.f32 %v2019_v14, %v811_v23 }
 0x165   :  { %v813_v34 = vpop.f32.mrf.mxu0  ;;  %v993_v9 = vmax.f32 %v946_v42, %v947_v54 }
 0x166   :  { %v1156_v37 = vsel %vm1155_vm11, %v1140_v28, %v1139_v15  ;;  %v991_v41 = vrot.slane %v990_v11, 1  ;;  %v1042_v57 = vmax.f32 %v960_v43, %v961_v10  ;;  %v948_v23 = vmax.f32 %v916_v40, 0.0 }
 0x167   :  { %v814_v0 = vpop.f32.mrf.mxu0 }
 0x168   :  { %v992_v45 = vmax.f32 %v990_v11, %v991_v41  ;;  %v917_v6 = vadd.f32 %v2024_v29, %v814_v0 }
 0x169   :  { %v816_v53 = vpop.f32.mrf.mxu0  ;;  %v867_v32 = vpop.f32.mrf.mxu1 }
 0x16a   :  { %v1086_v19 = vpack.c.bf16 %v992_v45, %v992_v45  ;;  %v930_v4 = vadd.f32 %v2019_v14, %v867_v32  ;;  %v949_v20 = vmax.f32 %v917_v6, 0.0  ;;  %v994_v45 = vrot.slane %v993_v9, 4 }
 0x16b   :  { %v869_v35 = vpop.f32.mrf.mxu1 }
 0x16c   :  { %v1141_v1 = vunpack.c.l.b16 %v1086_v19  ;;  %v962_v34 = vmax.f32 %v930_v4, 0.0  ;;  %v1000_v53 = vmax.f32 %v948_v23, %v949_v20 }
 0x16d   :  { %v870_v56 = vpop.f32.mrf.mxu1 }
 0x16e   :  { %v2038_v36 = vsel %vm1157_vm12, %v1141_v1, %v1156_v37  ;;  %v931_v52 = vadd.f32 %v2024_v29, %v870_v56  ;;  %v1001_v47 = vrot.slane %v1000_v53, 4 }
 0x16f   :  { %v819_v38 = vpop.f32.mrf.mxu0  ;;  %v872_v24 = vpop.f32.mrf.mxu1 }
 0x170   :  { %v918_v31 = vadd.f32 %v2019_v14, %v819_v38  ;;  %v963_v22 = vmax.f32 %v931_v52, 0.0 }
 0x171   :  { %v821_v58 = vpop.f32.mrf.mxu0 }
 0x172   :  { %v950_v32 = vmax.f32 %v918_v31, 0.0  ;;  %v1049_v56 = vmax.f32 %v962_v34, %v963_v22 }
 0x173   :  { %v822_v30 = vpop.f32.mrf.mxu0 }
 0x174   :  { %v919_v27 = vadd.f32 %v2024_v29, %v822_v30  ;;  %v1043_v30 = vrot.slane %v1042_v57, 4  ;;  %v1050_v50 = vrot.slane %v1049_v56, 4 }
 0x175   :  { %v824_v55 = vpop.f32.mrf.mxu0  ;;  %v875_v59 = vpop.f32.mrf.mxu1 }
 0x176   :  { %v932_v21 = vadd.f32 %v2019_v14, %v875_v59  ;;  %v951_v25 = vmax.f32 %v919_v27, 0.0  ;;  %v1044_v3 = vmax.f32 %v1042_v57, %v1043_v30 }
 0x177   :  { %v877_v2 = vpop.f32.mrf.mxu1 }
 0x178   :  { %v964_v19 = vmax.f32 %v932_v21, 0.0  ;;  %v1007_v55 = vmax.f32 %v950_v32, %v951_v25 }
 0x179   :  { %v878_v26 = vpop.f32.mrf.mxu1 }
 0x17a   :  { %v933_v8 = vadd.f32 %v2024_v29, %v878_v26  ;;  %v1008_v54 = vrot.slane %v1007_v55, 4 }
 0x17b   :  { %v827_v60 = vpop.f32.mrf.mxu0  ;;  %v880_v48 = vpop.f32.mrf.mxu1 }
 0x17c   :  { %v920_v46 = vadd.f32 %v2019_v14, %v827_v60  ;;  %v965_v15 = vmax.f32 %v933_v8, 0.0 }
 0x17d   :  { %v829_v61 = vpop.f32.mrf.mxu0 }
 0x17e   :  { %v952_v38 = vmax.f32 %v920_v46, 0.0  ;;  %v1056_v59 = vmax.f32 %v964_v19, %v965_v15 }
 0x17f   :  { %v830_v62 = vpop.f32.mrf.mxu0 }
 0x180   :  { %v921_v18 = vadd.f32 %v2024_v29, %v830_v62  ;;  %v1037_v62 = vmax.f32 %v2034_v51, %v1036_v12  ;;  %v1057_v6 = vrot.slane %v1056_v59, 4  ;;  %v1051_v12 = vmax.f32 %v1049_v56, %v1050_v50 }
 0x181   :  { %v832_v13 = vpop.f32.mrf.mxu0  ;;  %v883_v63 = vpop.f32.mrf.mxu1 }
 0x182   :  { %v934_v5 = vadd.f32 %v2019_v14, %v883_v63  ;;  %v953_v37 = vmax.f32 %v921_v18, 0.0  ;;  %v1038_v8 = vrot.slane %v1037_v62, 2  ;;  %v1058_v20 = vmax.f32 %v1056_v59, %v1057_v6 }
 0x183   :  { %v885_v44 = vpop.f32.mrf.mxu1  ;;  %v1052_v15 = vrot.slane %v1051_v12, 2 }
 0x184   :  { %v966_v24 = vmax.f32 %v934_v5, 0.0  ;;  %v1014_v60 = vmax.f32 %v952_v38, %v953_v37  ;;  %v995_v44 = vmax.f32 %v993_v9, %v994_v45  ;;  %v1009_v9 = vmax.f32 %v1007_v55, %v1008_v54 }
 0x185   :  { %v886_v7 = vpop.f32.mrf.mxu1  ;;  %v1039_v46 = vmax.f32 %v1037_v62, %v1038_v8  ;;  %v1059_v45 = vrot.slane %v1058_v20, 2  ;;  %v1053_v55 = vmax.f32 %v1051_v12, %v1052_v15 }
 0x186   :  { %v935_v33 = vadd.f32 %v2024_v29, %v886_v7  ;;  %v1015_v52 = vrot.slane %v1014_v60, 4  ;;  %v996_v18 = vrot.slane %v995_v44, 2 }
 0x187   :  { %v835_v49 = vpop.f32.mrf.mxu0  ;;  %v888_v17 = vpop.f32.mrf.mxu1  ;;  %v1054_v6 = vrot.slane %v1053_v55, 1 }
 0x188   :  { %v922_v28 = vadd.f32 %v2019_v14, %v835_v49  ;;  %v967_v41 = vmax.f32 %v935_v33, 0.0  ;;  %v1002_v49 = vmax.f32 %v1000_v53, %v1001_v47  ;;  %v1045_v33 = vrot.slane %v1044_v3, 2 }
 0x189   :  { %v837_v16 = vpop.f32.mrf.mxu0  ;;  %v1016_v21 = vmax.f32 %v1014_v60, %v1015_v52 }
 0x18a   :  { %v954_v2 = vmax.f32 %v922_v28, 0.0  ;;  %v1063_v48 = vmax.f32 %v966_v24, %v967_v41  ;;  %v1003_v5 = vrot.slane %v1002_v49, 2  ;;  %v997_v41 = vmax.f32 %v995_v44, %v996_v18 }
 0x18b   :  { %v838_v11 = vpop.f32.mrf.mxu0  ;;  %v1046_v53 = vmax.f32 %v1044_v3, %v1045_v33  ;;  %v1017_v32 = vrot.slane %v1016_v21, 2  ;;  %v1055_v18 = vmax.f32 %v1053_v55, %v1054_v6 }
 0x18c   :  { %v923_v0 = vadd.f32 %v2024_v29, %v838_v11  ;;  %v1064_v42 = vrot.slane %v1063_v48, 4  ;;  %v1004_v30 = vmax.f32 %v1002_v49, %v1003_v5 }
 0x18d   :  { %v840_v35 = vpop.f32.mrf.mxu0  ;;  %v891_v1 = vpop.f32.mrf.mxu1  ;;  %v1047_v62 = vrot.slane %v1046_v53, 1  ;;  %v1018_v47 = vmax.f32 %v1016_v21, %v1017_v32 }
 0x18e   :  { %v955_v58 = vmax.f32 %v923_v0, 0.0  ;;  %v936_v61 = vadd.f32 %v2019_v14, %v891_v1  ;;  %v1065_v16 = vmax.f32 %v1063_v48, %v1064_v42  ;;  %v1010_v0 = vrot.slane %v1009_v9, 2 }
 0x18f   :  { %v893_v26 = vpop.f32.mrf.mxu1  ;;  %v1060_v48 = vmax.f32 %v1058_v20, %v1059_v45  ;;  %v1019_v8 = vrot.slane %v1018_v47, 1 }
 0x190   :  { %v1021_v13 = vmax.f32 %v954_v2, %v955_v58  ;;  %v968_v40 = vmax.f32 %v936_v61, 0.0  ;;  %v1066_v19 = vrot.slane %v1065_v16, 2  ;;  %v1040_v58 = vrot.slane %v1039_v46, 1 }
 0x191   :  { %v894_v63 = vpop.f32.mrf.mxu1  ;;  %v998_v26 = vrot.slane %v997_v41, 1  ;;  %v1011_v60 = vmax.f32 %v1009_v9, %v1010_v0  ;;  %v1061_v42 = vrot.slane %v1060_v48, 1 }
 0x192   :  { %v937_v39 = vadd.f32 %v2024_v29, %v894_v63  ;;  %v1022_v17 = vrot.slane %v1021_v13, 4 }
 0x193   :  { %v843_v7 = vpop.f32.mrf.mxu0  ;;  %v896_v10 = vpop.f32.mrf.mxu1  ;;  %v1012_v52 = vrot.slane %v1011_v60, 1 }
 0x194   :  { %v969_v27 = vmax.f32 %v937_v39, 0.0  ;;  %v924_v4 = vadd.f32 %v2019_v14, %v843_v7  ;;  %v1023_v23 = vmax.f32 %v1021_v13, %v1022_v17  ;;  %v1067_v13 = vmax.f32 %v1065_v16, %v1066_v19 }
 0x195   :  { %v845_v51 = vpop.f32.mrf.mxu0  ;;  %v1041_v10 = vmax.f32 %v1039_v46, %v1040_v58  ;;  %v1048_v17 = vmax.f32 %v1046_v53, %v1047_v62  ;;  %v1013_v20 = vmax.f32 %v1011_v60, %v1012_v52 }
 0x196   :  { %v1070_v43 = vmax.f32 %v968_v40, %v969_v27  ;;  %v956_v11 = vmax.f32 %v924_v4, 0.0  ;;  %v1024_v56 = vrot.slane %v1023_v23, 2  ;;  %v999_v27 = vmax.f32 %v997_v41, %v998_v26 }
 0x197   :  { %v846_v31 = vpop.f32.mrf.mxu0  ;;  %v1068_v49 = vrot.slane %v1067_v13, 1  ;;  %v1093_v9 = vpack.c.bf16 %v1041_v10, %v1041_v10  ;;  %v1094_v5 = vpack.c.bf16 %v1048_v17, %v1048_v17  ;;  %v1089_v41 = vpack.c.bf16 %v1013_v20, %v1013_v20 }
 0x198   :  { %v1071_v57 = vrot.slane %v1070_v43, 4  ;;  %v925_v22 = vadd.f32 %v2024_v29, %v846_v31  ;;  %v1025_v39 = vmax.f32 %v1023_v23, %v1024_v56  ;;  %v1062_v31 = vmax.f32 %v1060_v48, %v1061_v42  ;;  %v1327_v42 = vld [vmem:[%s2087_s4] ss:$0 sm:$0xff] }
 0x199   :  { %v848_v25 = vpop.f32.mrf.mxu0  ;;  %v1087_v16 = vpack.c.bf16 %v999_v27, %v999_v27 }
 0x19a   :  { %v1072_v28 = vmax.f32 %v1070_v43, %v1071_v57  ;;  %v957_v34 = vmax.f32 %v925_v22, 0.0  ;;  %v899_v37 = vpop.f32.mrf.mxu1  ;;  %v1026_v51 = vrot.slane %v1025_v39, 1  ;;  %v1020_v57 = vmax.f32 %v1018_v47, %v1019_v8 }
 0x19b   :  { %v938_v24 = vadd.f32 %v2019_v14, %v899_v37  ;;  %v1005_v14 = vrot.slane %v1004_v30, 1  ;;  %v1069_v22 = vmax.f32 %v1067_v13, %v1068_v49  ;;  %v1148_v37 = vunpack.c.l.b16 %v1093_v9 }
 0x19c   :  { %v1028_v35 = vmax.f32 %v956_v11, %v957_v34  ;;  %v901_v1 = vpop.f32.mrf.mxu1  ;;  %v1073_v38 = vrot.slane %v1072_v28, 2  ;;  %v1027_v23 = vmax.f32 %v1025_v39, %v1026_v51  ;;  %v1095_v11 = vpack.c.bf16 %v1055_v18, %v1055_v18 }
 0x19d   :  { %v970_v3 = vmax.f32 %v938_v24, 0.0  ;;  %v1006_v4 = vmax.f32 %v1004_v30, %v1005_v14  ;;  %v1096_v0 = vpack.c.bf16 %v1062_v31, %v1062_v31  ;;  %v1142_v53 = vunpack.c.l.b16 %v1087_v16 }
 0x19e   :  { %v1029_v59 = vrot.slane %v1028_v35, 4  ;;  %v902_v2 = vpop.f32.mrf.mxu1  ;;  %v1074_v44 = vmax.f32 %v1072_v28, %v1073_v38  ;;  %v1090_v32 = vpack.c.bf16 %v1020_v57, %v1020_v57  ;;  %v1097_v19 = vpack.c.bf16 %v1069_v22, %v1069_v22 }
 0x19f   :  { %v939_v61 = vadd.f32 %v2024_v29, %v902_v2  ;;  %v1088_v28 = vpack.c.bf16 %v1006_v4, %v1006_v4  ;;  %v1149_v1 = vunpack.c.l.b16 %v1094_v5  ;;  %v1091_v56 = vpack.c.bf16 %v1027_v23, %v1027_v23 }
 0x1a0   :  { %v1030_v63 = vmax.f32 %v1028_v35, %v1029_v59  ;;  %v904_v50 = vpop.f32.mrf.mxu1  ;;  %v1075_v12 = vrot.slane %v1074_v44, 1  ;;  %v1150_v30 = vunpack.c.l.b16 %v1095_v11  ;;  %v1144_v59 = vunpack.c.l.b16 %v1089_v41 }
 0x1a1   :  { %v971_v54 = vmax.f32 %v939_v61, 0.0  ;;  %v1143_v58 = vunpack.c.l.b16 %v1088_v28  ;;  %v1151_v2 = vunpack.c.l.b16 %v1096_v0  ;;  %v1160_v48 = vsel %vm1159_vm13, %v1142_v53, %v2038_v36 }
 0x1a2   :  { %v1031_v7 = vrot.slane %v1030_v63, 2  ;;  %v1076_v25 = vmax.f32 %v1074_v44, %v1075_v12  ;;  %v1145_v61 = vunpack.c.l.b16 %v1090_v32  ;;  %v1152_v62 = vunpack.c.l.b16 %v1097_v19 }
 0x1a3   :  { %v1077_v40 = vmax.f32 %v970_v3, %v971_v54  ;;  %v1146_v13 = vunpack.c.l.b16 %v1091_v56  ;;  %v1162_v44 = vsel %vm1161_vm14, %v1143_v58, %v1160_v48 }
 0x1a4   :  { %v1032_v29 = vmax.f32 %v1030_v63, %v1031_v7  ;;  %v1098_v38 = vpack.c.bf16 %v1076_v25, %v1076_v25  ;;  %v1164_v54 = vsel %vm1163_vm15, %v1144_v59, %v1162_v44 }
 0x1a5   :  { %v1078_v43 = vrot.slane %v1077_v40, 4  ;;  %v1166_v36 = vsel %vm1165_vm0, %v1145_v61, %v1164_v54 }
 0x1a6   :  { %v1033_v33 = vrot.slane %v1032_v29, 1  ;;  %v1153_v63 = vunpack.c.l.b16 %v1098_v38  ;;  %v1168_v7 = vsel %vm1167_vm1, %v1146_v13, %v1166_v36 }
 0x1a7   :  { %v1079_v21 = vmax.f32 %v1077_v40, %v1078_v43 }
 0x1a8   :  { %v1034_v46 = vmax.f32 %v1032_v29, %v1033_v33 }
 0x1a9   :  { %v1080_v15 = vrot.slane %v1079_v21, 2 }
 0x1aa   :  { %v1092_v34 = vpack.c.bf16 %v1034_v46, %v1034_v46 }
 0x1ab   :  { %v1081_v45 = vmax.f32 %v1079_v21, %v1080_v15 }
 0x1ac   :  { %v1147_v35 = vunpack.c.l.b16 %v1092_v34 }
 0x1ad   :  { %v1082_v24 = vrot.slane %v1081_v45, 1 }
 0x1ae   :  { %v1169_v55 = vsel %vm1155_vm11, %v1148_v37, %v1147_v35 }
 0x1af   :  { %v1170_v26 = vsel %vm1157_vm12, %v1149_v1, %v1169_v55  ;;  %v1083_v60 = vmax.f32 %v1081_v45, %v1082_v24 }
 0x1b0   :  { %v1171_v47 = vsel %vm1159_vm13, %v1150_v30, %v1170_v26 }
 0x1b1   :  { %v1099_v50 = vpack.c.bf16 %v1083_v60, %v1083_v60  ;;  %v1172_v39 = vsel %vm1161_vm14, %v1151_v2, %v1171_v47 }
 0x1b2   :  { %v1173_v3 = vsel %vm1163_vm15, %v1152_v62, %v1172_v39 }
 0x1b3   :  { %v1154_v14 = vunpack.c.l.b16 %v1099_v50  ;;  %v1174_v6 = vsel %vm1165_vm0, %v1153_v63, %v1173_v3 }
 0x1b5   :  { %v1175_v10 = vsel %vm1167_vm1, %v1154_v14, %v1174_v6 }
 0x1b6   :  { %v1176_v52 = vpack.c.b16 %v1175_v10, %v1168_v7 }
 0x1b8   :  { %1362 = vmatmul.mubr.bf16.vlgmr.msra.gmra.mxu1 %v1176_v52 }
 0x278   :  { %v1260_v40 = vpop.f32.mrf.mxu1 }
 0x279   :  { %v1261_v27 = vadd.f32 %v1327_v42, %v1260_v40 }
 0x27a   :  { %v1363_v8 = vpop.f32.mrf.mxu1 }
 0x27b   :  { %1267 = vst [vmem:[#allocation2] sm:$0xff] %v1261_v27 }
 0x27c   :  { %v1263_v49 = vpop.f32.mrf.mxu1 }
 0x27d   :  { %v1264_v29 = vadd.f32 %v1327_v42, %v1263_v49 }
 0x27e   :  { %v1364_v17 = vpop.f32.mrf.mxu1 }
 0x27f   :  { %1268 = vst [vmem:[#allocation2 + $0x8] sm:$0xff] %v1264_v29 }
 0x280   :  { %1439 = shalt.err (!%p1436_p4)
}
 0x281   :  { %s1457_s22 = smov 128   ;;  %s1458_s4 = smov 8  }
 0x282   :  { %1280 = dma.vmem_to_hbm [thread:$0]  %s1275_s20, 256, %s2088_s5, [#allocation3], %s1457_s22, %s1457_s22, %s1458_s4  }
 0x283   :  { %1448 = dma.done.wait [#allocation3], 256  }
 0x284   :  { %1449 = vsyncadd [#allocation3], 4294967040 }
 0x285   :  { %1284 = vsyncpa [#allocation3], 1 }

</bundles_post_ra>
